<compile_context>
chip_gen: v7x
topology: tpu7x:2x2x1
jax: 0.10.0
libtpu: 0.0.40
codegen_flags: <defaults>
</compile_context>

<pallas_src>
import functools
import math

import jax
import jax.numpy as jnp
from jax.experimental import pallas as pl
from jax.experimental.pallas import tpu as pltpu

_MIB = 1024 * 1024


# ---------------------------------------------------------------------------
# helpers: generation detection + tiling heuristics
# ---------------------------------------------------------------------------
def _round_up(x, m):
    return (x + m - 1) // m * m


def _cdiv(a, b):
    return (a + b - 1) // b


def _tpu_target():
    """Return (generation tag, per-core VMEM capacity bytes)."""
    gen, cap = "unknown", 64 * _MIB            # conservative default
    try:
        kind = jax.devices()[0].device_kind.lower()
    except Exception:
        kind = ""
    if "v7" in kind:
        gen, cap = "v7x", 64 * _MIB
    elif "v6" in kind:
        gen, cap = "v6e", 128 * _MIB
    elif "v5" in kind and ("lite" in kind or "v5e" in kind):
        gen, cap = "v5e", 128 * _MIB
    elif "v5" in kind:
        gen, cap = "v5p", 128 * _MIB
    elif "v4" in kind:
        gen, cap = "v4", 128 * _MIB
    try:                                        # refine from hardware query if available
        info_cap = int(getattr(pltpu.get_tpu_info(), "vmem_capacity_bytes", 0))
        if info_cap > 0:
            cap = info_cap
    except Exception:
        pass
    return gen, cap


def _choose_tiles(n, hdim, d, itemsize, gen, vmem_cap):
    """Pick (tile_n, tile_h, weight_buffer_count) with a generation-aware VMEM budget."""
    sub = {4: 8, 2: 16, 1: 32}.get(itemsize, 8)      # dtype-aware min sublane tile
    target = {"v5e": 256, "v5p": 512, "v6e": 512, "v7x": 512}.get(gen, 256)
    n_buf = 3 if gen == "v5e" else 2                 # deeper weight buffering on v5e
    budget = vmem_cap // 2

    tile_n = min(target, _round_up(n, sub))
    if gen == "v7x" and n > 2 * sub:
        # 2 TensorCores per chip: keep >= 2 token tiles so the parallel axis feeds both.
        tile_n = min(tile_n, _round_up(_cdiv(n, 2), sub))
    tile_n = max(tile_n, sub)

    def pick_h(tn):
        cands = [t for t in (1024, 512, 256, 128) if hdim % t == 0] or [hdim]
        for t in cands:
            est = (3 * t * d * itemsize * n_buf      # fused w13 (2t,d) + w2 (d,t) tiles
                   + 2 * tn * d * itemsize * 2       # x + out blocks, double buffered
                   + tn * d * 4                      # f32 accumulator scratch
                   + 3 * tn * t * 4                  # hh (2t) + act (t) f32 intermediates
                   + 2 * tn * 4 * 2)                 # gate column
            if est <= budget:
                return t, True
        return cands[-1], False

    tile_h, ok = pick_h(tile_n)
    while not ok and tile_n > sub:
        tile_n = max(sub, _round_up(tile_n // 2, sub))
        tile_h, ok = pick_h(tile_n)
    return tile_n, tile_h, n_buf


# ---------------------------------------------------------------------------
# Kernel 1: router gating — scores = softmax(x @ Wg.T), tiled over tokens.
# Output is lane-dense (padded to a multiple of 128 experts, masked in-kernel).
# ---------------------------------------------------------------------------
def _router_kernel(x_ref, wg_ref, s_ref, *, n_exp):
    logits = jax.lax.dot_general(
        x_ref[...], wg_ref[...],
        dimension_numbers=(((1,), (1,)), ((), ())),
        preferred_element_type=jnp.float32)                     # (tile_n, e_pad)
    lane = jax.lax.broadcasted_iota(jnp.int32, logits.shape, 1)
    logits = jnp.where(lane < n_exp, logits, -1e30)             # mask padded experts
    m = jnp.max(logits, axis=-1, keepdims=True)
    ex = jnp.exp(logits - m)
    s_ref[...] = ex / jnp.sum(ex, axis=-1, keepdims=True)


def router_scores(x_pad, w_gate, tile_n):
    n_pad, d = x_pad.shape
    n_exp = w_gate.shape[0]
    e_pad = _round_up(max(n_exp, 128), 128)        # lane-dense output (no vst.msk)
    wg = jnp.pad(w_gate, ((0, e_pad - n_exp), (0, 0)))
    nt = n_pad // tile_n
    out = pl.pallas_call(
        functools.partial(_router_kernel, n_exp=n_exp),
        out_shape=jax.ShapeDtypeStruct((n_pad, e_pad), jnp.float32),
        grid=(nt,),
        in_specs=[
            pl.BlockSpec((tile_n, d), lambda i: (i, 0)),
            pl.BlockSpec((e_pad, d), lambda i: (0, 0)),
        ],
        out_specs=pl.BlockSpec((tile_n, e_pad), lambda i: (i, 0)),
        compiler_params=pltpu.CompilerParams(
            dimension_semantics=("parallel",)),
    )(x_pad, wg)
    return out[:, :n_exp]


# ---------------------------------------------------------------------------
# Kernel 2: fused (routed + shared) expert SwiGLU FFN with gated accumulation.
# Grid: (token tiles ["parallel"], H tiles ["arbitrary"], expert slots ["arbitrary"]).
# Expert slots are a *compacted* per-tile list delivered via scalar prefetch; the
# weight / gate index_maps read the expert id from SMEM, so only active experts'
# weights are streamed.  acc (f32 VMEM) is written once per token tile.
# ---------------------------------------------------------------------------
def moe_combine(x_pad, w13, w2, gates, slot_ids, slot_valid,
                *, tile_n, tile_h, a_slots, vmem_cap, n_buf):
    n_pad, d = x_pad.shape
    e_tot, nh, two_th, _ = w13.shape
    nt = n_pad // tile_n

    def wspec(shape, imap):
        if n_buf > 2:
            return pl.BlockSpec(shape, imap, pipeline_mode=pl.Buffered(n_buf))
        return pl.BlockSpec(shape, imap)

    def kernel(ids_ref, vld_ref, x_ref, w13_ref, w2_ref, g_ref, out_ref, acc_ref):
        i = pl.program_id(0)
        h = pl.program_id(1)
        s = pl.program_id(2)

        @pl.when((h == 0) & (s == 0))
        def _init():
            acc_ref[...] = jnp.zeros_like(acc_ref)

        # Padded slots repeat the previous slot's expert id (DMA elided, slots are the
        # innermost axis) and skip all compute here.
        @pl.when(vld_ref[i * a_slots + s] > 0)
        def _compute():
            x = x_ref[...]                                           # (TILE_N, D)
            hh = jax.lax.dot_general(                                # fused w1|w3 stream
                x, w13_ref[0, 0],
                dimension_numbers=(((1,), (1,)), ((), ())),
                preferred_element_type=jnp.float32)                  # (TILE_N, 2*TILE_H)
            h1 = hh[:, :tile_h]
            h3 = hh[:, tile_h:]
            act = (jax.nn.silu(h1) * h3).astype(x.dtype)             # SwiGLU
            part = jax.lax.dot_general(
                act, w2_ref[0],
                dimension_numbers=(((1,), (1,)), ((), ())),
                preferred_element_type=jnp.float32)                  # (TILE_N, D)
            acc_ref[...] += g_ref[0] * part                          # gate applied in f32

        @pl.when((h == pl.num_programs(1) - 1) & (s == pl.num_programs(2) - 1))
        def _finalize():
            out_ref[...] = acc_ref[...].astype(out_ref.dtype)

    grid_spec = pltpu.PrefetchScalarGridSpec(
        num_scalar_prefetch=2,
        grid=(nt, nh, a_slots),          # slots innermost -> repeated ids elide re-DMA
        in_specs=[
            pl.BlockSpec((tile_n, d), lambda i, h, s, ids, vld: (i, 0)),
            wspec((1, 1, two_th, d),
                  lambda i, h, s, ids, vld: (ids[i * a_slots + s], h, 0, 0)),
            wspec((1, d, tile_h),
                  lambda i, h, s, ids, vld: (ids[i * a_slots + s], 0, h)),
            pl.BlockSpec((1, tile_n, 1),
                         lambda i, h, s, ids, vld: (ids[i * a_slots + s], i, 0)),
        ],
        out_specs=pl.BlockSpec((tile_n, d), lambda i, h, s, ids, vld: (i, 0)),
        scratch_shapes=[pltpu.VMEM((tile_n, d), jnp.float32)],
    )
    vmem_limit = max(32 * _MIB, min(int(vmem_cap * 3 // 4), 100 * _MIB))
    return pl.pallas_call(
        kernel,
        out_shape=jax.ShapeDtypeStruct((n_pad, d), x_pad.dtype),
        grid_spec=grid_spec,
        compiler_params=pltpu.CompilerParams(
            dimension_semantics=("parallel", "arbitrary", "arbitrary"),
            vmem_limit_bytes=vmem_limit),
    )(slot_ids, slot_valid, x_pad, w13, w2, gates)


# ---------------------------------------------------------------------------
# Full MOElLayer forward (eval mode)
# ---------------------------------------------------------------------------
def moe_layer_forward(x, params, *, top_k, norm_topk_prob=True):
    b, s, d = x.shape
    n = b * s

    w1, w3, w2, w_gate = params["w1"], params["w3"], params["w2"], params["w_gate"]
    n_routed, n_shared = params["n_routed"], params["n_shared"]
    e_tot, hdim, _ = w1.shape
    compute_dtype = w1.dtype
    itemsize = jnp.dtype(compute_dtype).itemsize

    gen, vmem_cap = _tpu_target()
    tile_n, tile_h, n_buf = _choose_tiles(n, hdim, d, itemsize, gen, vmem_cap)
    n_pad = _round_up(n, tile_n)
    nt = n_pad // tile_n
    nh = hdim // tile_h

    xf = x.reshape(n, d).astype(compute_dtype)
    x_pad = jnp.pad(xf, ((0, n_pad - n), (0, 0)))

    # ---- router (Pallas, lane-dense) + top-k / renorm (XLA) ----------------
    # TODO(synk): top-k selection / renormalization and the training-time aux loss
    # stay in XLA (no clean Pallas TPU top-k/sort primitive); aux_loss = 0 in eval.
    scores = router_scores(x_pad, w_gate.astype(compute_dtype), tile_n)[:n]   # (N, E)
    topk_w, topk_idx = jax.lax.top_k(scores, top_k)
    if top_k > 1 and norm_topk_prob:
        topk_w = topk_w / (jnp.sum(topk_w, axis=-1, keepdims=True) + 1e-20)

    # Dense (N, E) combine weights == moe_infer's gather + scatter_add.
    gate_routed = jnp.sum(
        jax.nn.one_hot(topk_idx, n_routed, dtype=jnp.float32)
        * topk_w[..., None].astype(jnp.float32), axis=1)
    # Shared experts fused as extra "experts" with unit gate; padded rows gated to 0.
    gate_full = jnp.concatenate(
        [gate_routed, jnp.ones((n, n_shared), jnp.float32)], axis=1)           # (N, E+S)
    gate_full = jnp.pad(gate_full, ((0, n_pad - n), (0, 0)))
    gates = jnp.transpose(gate_full)[:, :, None]                               # (E+S, N_pad, 1)

    # ---- compact routing: per token tile, only the experts that got tokens --
    a_slots = min(n_routed, tile_n * top_k) + n_shared
    active = jnp.any(gate_full.reshape(nt, tile_n, e_tot) != 0.0, axis=1)      # (nt, E+S)
    ids = jnp.arange(e_tot, dtype=jnp.int32)
    order = jnp.argsort(jnp.where(active, ids, ids + e_tot), axis=1)           # active first
    slot_ids = order[:, :a_slots].astype(jnp.int32)                            # (nt, A)
    slot_valid = jnp.take_along_axis(active, slot_ids, axis=1)
    n_active = jnp.sum(active.astype(jnp.int32), axis=1)
    last_idx = jnp.clip(n_active - 1, 0, a_slots - 1)
    last_id = jnp.take_along_axis(slot_ids, last_idx[:, None], axis=1)
    slot_ids = jnp.where(slot_valid, slot_ids, last_id)                        # repeat -> DMA elided
    slot_ids = slot_ids.reshape(-1)                       # 1D int32 -> tiny SMEM footprint
    slot_valid = slot_valid.reshape(-1).astype(jnp.int32)

    # ---- fused gate/up projection: one weight stream + one MXU push per step.
    # (When params are call arguments, precompute this reorg once outside the step fn;
    #  here, under jit with closed-over params, it constant-folds.)
    w13 = jnp.concatenate(
        [w1.reshape(e_tot, nh, tile_h, d), w3.reshape(e_tot, nh, tile_h, d)],
        axis=2)                                            # (E+S, nh, 2*tile_h, D)

    y = moe_combine(x_pad, w13, w2, gates, slot_ids, slot_valid,
                    tile_n=tile_n, tile_h=tile_h, a_slots=a_slots,
                    vmem_cap=vmem_cap, n_buf=n_buf)[:n]

    aux_loss = jnp.float32(0.0)   # eval mode: training aux-loss branch not taken
    return y.reshape(b, s, d).astype(x.dtype), aux_loss


# ---------------------------------------------------------------------------
# Deterministic parameter init (kaiming_uniform-style bounds, like nn.Linear).
# Routed experts occupy rows [0, E); shared experts rows [E, E+S).  bf16 default.
# ---------------------------------------------------------------------------
def init_params(key, *, d, hdim, n_routed, n_shared, dtype=jnp.bfloat16):
    def lin(k, out_f, in_f):
        bound = 1.0 / math.sqrt(in_f)
        return jax.random.uniform(k, (out_f, in_f), jnp.float32,
                                  -bound, bound).astype(dtype)

    n_total = n_routed + n_shared
    ks = jax.random.split(key, 4)
    return {
        "w_gate": lin(ks[0], n_routed, d),
        "w1": jnp.stack([lin(k, hdim, d) for k in jax.random.split(ks[1], n_total)]),
        "w3": jnp.stack([lin(k, hdim, d) for k in jax.random.split(ks[2], n_total)]),
        "w2": jnp.stack([lin(k, d, hdim) for k in jax.random.split(ks[3], n_total)]),
        "n_routed": int(n_routed),
        "n_shared": int(n_shared),
    }


if __name__ == "__main__":
    # LMConfig-style small config
    B, S, D = 2, 8, 32
    multiple_of = 32
    H = int(2 * (4 * D) / 3)
    H = multiple_of * ((H + multiple_of - 1) // multiple_of)   # -> 96
    E = 4            # n_routed_experts
    TOP_K = 2        # num_experts_per_tok
    N_SHARED = 1     # n_shared_experts

    key = jax.random.PRNGKey(0)
    k_x, k_p = jax.random.split(key)
    x32 = jax.random.normal(k_x, (B, S, D), jnp.float32)

    # Pure-JAX reference (same math as the PyTorch eval path), computed in f32.
    def reference(xx, params):
        xr = xx.reshape(B * S, D).astype(jnp.float32)
        wg = params["w_gate"].astype(jnp.float32)
        sc = jax.nn.softmax(xr @ wg.T, axis=-1)
        tw, ti = jax.lax.top_k(sc, TOP_K)
        tw = tw / (jnp.sum(tw, axis=-1, keepdims=True) + 1e-20)
        gate = jnp.sum(jax.nn.one_hot(ti, E) * tw[..., None], axis=1)
        gate = jnp.concatenate([gate, jnp.ones((B * S, N_SHARED))], axis=1)
        out = jnp.zeros((B * S, D), jnp.float32)
        for eidx in range(E + N_SHARED):
            w1e = params["w1"][eidx].astype(jnp.float32)
            w3e = params["w3"][eidx].astype(jnp.float32)
            w2e = params["w2"][eidx].astype(jnp.float32)
            ff = (jax.nn.silu(xr @ w1e.T) * (xr @ w3e.T)) @ w2e.T
            out = out + gate[:, eidx:eidx + 1] * ff
        return out.reshape(B, S, D)

    # --- tight correctness check in f32 --------------------------------------
    params32 = init_params(k_p, d=D, hdim=H, n_routed=E, n_shared=N_SHARED,
                           dtype=jnp.float32)
    fwd32 = jax.jit(lambda xx: moe_layer_forward(xx, params32, top_k=TOP_K)[0])
    y32 = jax.block_until_ready(fwd32(x32))
    assert y32.shape == (B, S, D)
    ref32 = reference(x32, params32)
    assert jnp.allclose(y32.astype(jnp.float32), ref32, atol=2e-3, rtol=2e-3)

    # --- bf16 run (production dtype path): shape / finiteness / loose error ---
    params16 = init_params(k_p, d=D, hdim=H, n_routed=E, n_shared=N_SHARED,
                           dtype=jnp.bfloat16)
    x16 = x32.astype(jnp.bfloat16)
    fwd16 = jax.jit(lambda xx: moe_layer_forward(xx, params16, top_k=TOP_K)[0])
    y16 = jax.block_until_ready(fwd16(x16))
    assert y16.shape == (B, S, D)
    y16f = y16.astype(jnp.float32)
    assert bool(jnp.all(jnp.isfinite(y16f)))
    ref16 = reference(x16, params16)
    # loose check: bf16 rounding can flip near-tied top-k choices on single tokens,
    # so compare the mean absolute error rather than elementwise.
    assert float(jnp.mean(jnp.abs(y16f - ref16))) < 5e-2

    print("KERNEL_OK")
</pallas_src>

<mosaic_0001>
module attributes {stable_mosaic.version = 11 : i64} {
  func.func @_router_kernel(%arg0: i32, %arg1: memref<16x32xf32, #tpu.memory_space<vmem>>, %arg2: memref<128x32xf32, #tpu.memory_space<vmem>>, %arg3: memref<16x128xf32, #tpu.memory_space<vmem>>) attributes {dimension_semantics = [#tpu.dimension_semantics<parallel>], iteration_bounds = array<i64: 1>, scalar_prefetch = 0 : i64, scratch_operands = 0 : i64, tpu.core_type = #tpu.core_type<tc>, window_params = [{transform_indices = @transform_0, window_bounds = array<i64: 16, 32>}, {pipeline_mode = #tpu.pipeline_mode<synchronous>, transform_indices = @transform_1, window_bounds = array<i64: 128, 32>}, {transform_indices = @transform_2, window_bounds = array<i64: 16, 128>}]} {
    %c0 = arith.constant 0 : index
    %c0_0 = arith.constant 0 : index
    %0 = vector.load %arg1[%c0, %c0_0] : memref<16x32xf32, #tpu.memory_space<vmem>>, vector<16x32xf32>
    %c0_1 = arith.constant 0 : index
    %c0_2 = arith.constant 0 : index
    %1 = vector.load %arg2[%c0_1, %c0_2] : memref<128x32xf32, #tpu.memory_space<vmem>>, vector<128x32xf32>
    %cst = arith.constant dense<0.000000e+00> : vector<16x128xf32>
    %2 = tpu.matmul %0, %1, %cst {dimension_numbers = #tpu.dot_dimension_numbers<[1], [1], [0], [0], [0, 0, 1, 0], [], []>} : vector<16x32xf32>, vector<128x32xf32>, vector<16x128xf32> -> vector<16x128xf32>
    %3 = tpu.iota {dimensions = array<i32: 1>} : vector<16x128xi32>
    %c4_i32 = arith.constant 4 : i32
    %4 = vector.broadcast %c4_i32 : i32 to vector<16x128xi32>
    %5 = arith.cmpi slt, %3, %4 : vector<16x128xi32>
    %cst_3 = arith.constant -1.000000e+30 : f32
    %6 = vector.broadcast %cst_3 : f32 to vector<16x128xf32>
    %7 = arith.select %5, %2, %6 : vector<16x128xi1>, vector<16x128xf32>
    %cst_4 = arith.constant dense<0xFF800000> : vector<16xf32>
    %8 = vector.multi_reduction <maximumf>, %7, %cst_4 [1] : vector<16x128xf32> to vector<16xf32>
    %9 = vector.shape_cast %8 : vector<16xf32> to vector<16x1xf32>
    %10 = vector.broadcast %9 : vector<16x1xf32> to vector<16x128xf32>
    %11 = arith.subf %7, %10 : vector<16x128xf32>
    %12 = math.exp %11 : vector<16x128xf32>
    %cst_5 = arith.constant dense<0.000000e+00> : vector<16xf32>
    %13 = vector.multi_reduction <add>, %12, %cst_5 [1] : vector<16x128xf32> to vector<16xf32>
    %14 = vector.shape_cast %13 : vector<16xf32> to vector<16x1xf32>
    %15 = vector.broadcast %14 : vector<16x1xf32> to vector<16x128xf32>
    %16 = arith.divf %12, %15 : vector<16x128xf32>
    %c0_6 = arith.constant 0 : index
    %c0_7 = arith.constant 0 : index
    %17 = vector.load %arg3[%c0_6, %c0_7] : memref<16x128xf32, #tpu.memory_space<vmem>>, vector<16x128xf32>
    tpu.vector_store %arg3[%c0_6, %c0_7], %16 {strides = array<i32>} : memref<16x128xf32, #tpu.memory_space<vmem>>, vector<16x128xf32>,
    return
  }
  func.func @transform_0(%arg0: i32) -> (i32, i32) {
    %c0_i32 = arith.constant 0 : i32
    %c0_i32_0 = arith.constant 0 : i32
    return %arg0, %c0_i32 : i32, i32
  }
  func.func @transform_1(%arg0: i32) -> (i32, i32) {
    %c0_i32 = arith.constant 0 : i32
    %c0_i32_0 = arith.constant 0 : i32
    %c0_i32_1 = arith.constant 0 : i32
    return %c0_i32, %c0_i32_0 : i32, i32
  }
  func.func @transform_2(%arg0: i32) -> (i32, i32) {
    %c0_i32 = arith.constant 0 : i32
    %c0_i32_0 = arith.constant 0 : i32
    return %arg0, %c0_i32 : i32, i32
  }
}

module attributes {stable_mosaic.version = 11 : i64} {
  func.func @kernel(%arg0: i32, %arg1: i32, %arg2: i32, %arg3: memref<5xi32, #tpu.memory_space<smem>>, %arg4: memref<5xi32, #tpu.memory_space<smem>>, %arg5: memref<16x32xf32, #tpu.memory_space<vmem>>, %arg6: memref<1x1x192x32xf32, #tpu.memory_space<vmem>>, %arg7: memref<1x32x96xf32, #tpu.memory_space<vmem>>, %arg8: memref<1x16x1xf32, #tpu.memory_space<vmem>>, %arg9: memref<16x32xf32, #tpu.memory_space<vmem>>, %arg10: memref<16x32xf32, #tpu.memory_space<vmem>>) attributes {dimension_semantics = [#tpu.dimension_semantics<parallel>, #tpu.dimension_semantics<arbitrary>, #tpu.dimension_semantics<arbitrary>], iteration_bounds = array<i64: 1, 1, 5>, scalar_prefetch = 2 : i64, scratch_operands = 1 : i64, tpu.core_type = #tpu.core_type<tc>, window_params = [{transform_indices = @transform_0, window_bounds = array<i64: 16, 32>}, {transform_indices = @transform_1, window_bounds = array<i64: 1, 1, 192, 32>}, {transform_indices = @transform_2, window_bounds = array<i64: 1, 32, 96>}, {transform_indices = @transform_3, window_bounds = array<i64: 1, 16, 1>}, {transform_indices = @transform_4, window_bounds = array<i64: 16, 32>}]} {
    %c0_i32 = arith.constant 0 : i32
    %0 = arith.cmpi eq, %arg1, %c0_i32 : i32
    %c0_i32_0 = arith.constant 0 : i32
    %1 = arith.cmpi eq, %arg2, %c0_i32_0 : i32
    %2 = arith.andi %0, %1 : i1
    %3 = arith.extui %2 : i1 to i32
    %c0_i32_1 = arith.constant 0 : i32
    %4 = arith.cmpi ne, %3, %c0_i32_1 : i32
    scf.if %4 {
      %cst = arith.constant 0.000000e+00 : f32
      %17 = vector.broadcast %cst : f32 to vector<16x32xf32>
      %c0 = arith.constant 0 : index
      %c0_6 = arith.constant 0 : index
      %18 = vector.load %arg10[%c0, %c0_6] : memref<16x32xf32, #tpu.memory_space<vmem>>, vector<16x32xf32>
      tpu.vector_store %arg10[%c0, %c0_6], %17 {strides = array<i32>} : memref<16x32xf32, #tpu.memory_space<vmem>>, vector<16x32xf32>,
    } else {
    }
    %c5_i32 = arith.constant 5 : i32
    %5 = arith.muli %arg0, %c5_i32 : i32
    %6 = arith.addi %5, %arg2 : i32
    %7 = arith.index_cast %6 : i32 to index
    %8 = memref.load %arg4[%7] : memref<5xi32, #tpu.memory_space<smem>>
    %c0_i32_2 = arith.constant 0 : i32
    %9 = arith.cmpi sgt, %8, %c0_i32_2 : i32
    %10 = arith.extui %9 : i1 to i32
    %c0_i32_3 = arith.constant 0 : i32
    %11 = arith.cmpi ne, %10, %c0_i32_3 : i32
    scf.if %11 {
      %c0 = arith.constant 0 : index
      %c0_6 = arith.constant 0 : index
      %17 = vector.load %arg5[%c0, %c0_6] : memref<16x32xf32, #tpu.memory_space<vmem>>, vector<16x32xf32>
      %c0_7 = arith.constant 0 : index
      %c0_8 = arith.constant 0 : index
      %c0_9 = arith.constant 0 : index
      %c0_10 = arith.constant 0 : index
      %18 = vector.load %arg6[%c0_7, %c0_8, %c0_9, %c0_10] : memref<1x1x192x32xf32, #tpu.memory_space<vmem>>, vector<1x1x192x32xf32>
      %19 = vector.shape_cast %18 : vector<1x1x192x32xf32> to vector<192x32xf32>
      %cst = arith.constant dense<0.000000e+00> : vector<16x192xf32>
      %20 = tpu.matmul %17, %19, %cst {dimension_numbers = #tpu.dot_dimension_numbers<[1], [1], [0], [0], [0, 0, 1, 0], [], []>} : vector<16x32xf32>, vector<192x32xf32>, vector<16x192xf32> -> vector<16x192xf32>
      %21 = vector.extract_strided_slice %20 {offsets = [0, 0], sizes = [16, 96], strides = [1, 1]} : vector<16x192xf32> to vector<16x96xf32>
      %22 = vector.extract_strided_slice %20 {offsets = [0, 96], sizes = [16, 96], strides = [1, 1]} : vector<16x192xf32> to vector<16x96xf32>
      %23 = arith.negf %21 : vector<16x96xf32>
      %24 = math.exp %23 : vector<16x96xf32>
      %cst_11 = arith.constant 1.000000e+00 : f32
      %25 = vector.broadcast %cst_11 : f32 to vector<16x96xf32>
      %26 = arith.addf %25, %24 : vector<16x96xf32>
      %27 = arith.divf %25, %26 : vector<16x96xf32>
      %28 = arith.mulf %21, %27 : vector<16x96xf32>
      %29 = arith.mulf %28, %22 : vector<16x96xf32>
      %c0_12 = arith.constant 0 : index
      %c0_13 = arith.constant 0 : index
      %c0_14 = arith.constant 0 : index
      %30 = vector.load %arg7[%c0_12, %c0_13, %c0_14] : memref<1x32x96xf32, #tpu.memory_space<vmem>>, vector<1x32x96xf32>
      %31 = vector.shape_cast %30 : vector<1x32x96xf32> to vector<32x96xf32>
      %cst_15 = arith.constant dense<0.000000e+00> : vector<16x32xf32>
      %32 = tpu.matmul %29, %31, %cst_15 {dimension_numbers = #tpu.dot_dimension_numbers<[1], [1], [0], [0], [0, 0, 1, 0], [], []>} : vector<16x96xf32>, vector<32x96xf32>, vector<16x32xf32> -> vector<16x32xf32>
      %c0_16 = arith.constant 0 : index
      %c0_17 = arith.constant 0 : index
      %33 = vector.load %arg10[%c0_16, %c0_17] : memref<16x32xf32, #tpu.memory_space<vmem>>, vector<16x32xf32>
      %c0_18 = arith.constant 0 : index
      %c0_19 = arith.constant 0 : index
      %c0_20 = arith.constant 0 : index
      %34 = vector.load %arg8[%c0_18, %c0_19, %c0_20] : memref<1x16x1xf32, #tpu.memory_space<vmem>>, vector<1x16x1xf32>
      %35 = vector.shape_cast %34 : vector<1x16x1xf32> to vector<16x1xf32>
      %36 = vector.broadcast %35 : vector<16x1xf32> to vector<16x32xf32>
      %37 = arith.mulf %36, %32 : vector<16x32xf32>
      %38 = arith.addf %33, %37 : vector<16x32xf32>
      %c0_21 = arith.constant 0 : index
      %c0_22 = arith.constant 0 : index
      %39 = vector.load %arg10[%c0_21, %c0_22] : memref<16x32xf32, #tpu.memory_space<vmem>>, vector<16x32xf32>
      tpu.vector_store %arg10[%c0_21, %c0_22], %38 {strides = array<i32>} : memref<16x32xf32, #tpu.memory_space<vmem>>, vector<16x32xf32>,
    } else {
    }
    %c0_i32_4 = arith.constant 0 : i32
    %12 = arith.cmpi eq, %arg1, %c0_i32_4 : i32
    %c4_i32 = arith.constant 4 : i32
    %13 = arith.cmpi eq, %arg2, %c4_i32 : i32
    %14 = arith.andi %12, %13 : i1
    %15 = arith.extui %14 : i1 to i32
    %c0_i32_5 = arith.constant 0 : i32
    %16 = arith.cmpi ne, %15, %c0_i32_5 : i32
    scf.if %16 {
      %c0 = arith.constant 0 : index
      %c0_6 = arith.constant 0 : index
      %17 = vector.load %arg10[%c0, %c0_6] : memref<16x32xf32, #tpu.memory_space<vmem>>, vector<16x32xf32>
      %c0_7 = arith.constant 0 : index
      %c0_8 = arith.constant 0 : index
      %18 = vector.load %arg9[%c0_7, %c0_8] : memref<16x32xf32, #tpu.memory_space<vmem>>, vector<16x32xf32>
      tpu.vector_store %arg9[%c0_7, %c0_8], %17 {strides = array<i32>} : memref<16x32xf32, #tpu.memory_space<vmem>>, vector<16x32xf32>,
    } else {
    }
    return
  }
  func.func @transform_0(%arg0: i32, %arg1: i32, %arg2: i32, %arg3: memref<5xi32, #tpu.memory_space<smem>>, %arg4: memref<5xi32, #tpu.memory_space<smem>>) -> (i32, i32) {
    %c0_i32 = arith.constant 0 : i32
    %c0_i32_0 = arith.constant 0 : i32
    return %arg0, %c0_i32 : i32, i32
  }
  func.func @transform_1(%arg0: i32, %arg1: i32, %arg2: i32, %arg3: memref<5xi32, #tpu.memory_space<smem>>, %arg4: memref<5xi32, #tpu.memory_space<smem>>) -> (i32, i32, i32, i32) {
    %c5_i32 = arith.constant 5 : i32
    %0 = arith.muli %arg0, %c5_i32 : i32
    %1 = arith.addi %0, %arg2 : i32
    %2 = arith.index_cast %1 : i32 to index
    %3 = memref.load %arg3[%2] : memref<5xi32, #tpu.memory_space<smem>>
    %c0_i32 = arith.constant 0 : i32
    %c0_i32_0 = arith.constant 0 : i32
    %c0_i32_1 = arith.constant 0 : i32
    return %3, %arg1, %c0_i32, %c0_i32_0 : i32, i32, i32, i32
  }
  func.func @transform_2(%arg0: i32, %arg1: i32, %arg2: i32, %arg3: memref<5xi32, #tpu.memory_space<smem>>, %arg4: memref<5xi32, #tpu.memory_space<smem>>) -> (i32, i32, i32) {
    %c5_i32 = arith.constant 5 : i32
    %0 = arith.muli %arg0, %c5_i32 : i32
    %1 = arith.addi %0, %arg2 : i32
    %2 = arith.index_cast %1 : i32 to index
    %3 = memref.load %arg3[%2] : memref<5xi32, #tpu.memory_space<smem>>
    %c0_i32 = arith.constant 0 : i32
    %c0_i32_0 = arith.constant 0 : i32
    return %3, %c0_i32, %arg1 : i32, i32, i32
  }
  func.func @transform_3(%arg0: i32, %arg1: i32, %arg2: i32, %arg3: memref<5xi32, #tpu.memory_space<smem>>, %arg4: memref<5xi32, #tpu.memory_space<smem>>) -> (i32, i32, i32) {
    %c5_i32 = arith.constant 5 : i32
    %0 = arith.muli %arg0, %c5_i32 : i32
    %1 = arith.addi %0, %arg2 : i32
    %2 = arith.index_cast %1 : i32 to index
    %3 = memref.load %arg3[%2] : memref<5xi32, #tpu.memory_space<smem>>
    %c0_i32 = arith.constant 0 : i32
    %c0_i32_0 = arith.constant 0 : i32
    return %3, %arg0, %c0_i32 : i32, i32, i32
  }
  func.func @transform_4(%arg0: i32, %arg1: i32, %arg2: i32, %arg3: memref<5xi32, #tpu.memory_space<smem>>, %arg4: memref<5xi32, #tpu.memory_space<smem>>) -> (i32, i32) {
    %c0_i32 = arith.constant 0 : i32
    %c0_i32_0 = arith.constant 0 : i32
    return %arg0, %c0_i32 : i32, i32
  }
}

</mosaic_0001>

<bundles_post_ra>
// kernel: _lambda_.2
= control target key start
LH: loop header
LB: loop body
LE: loop exit
PB: predicated region body
PF: predicated region fallthrough
CT: control target
= control target key end

     0   :  { %7 = vsyncpa [#allocation3], 0  ;;  %s486_s0 = inlined_call_operand.hbm [shape: f32[16,32], index: 0, kind: input, shape index: {}]   ;;  %s487_s1 = inlined_call_operand.hbm [shape: f32[128,32], index: 1, kind: input, shape index: {}]   ;;  %s488_s2 = inlined_call_operand.vmem [shape: f32[16,128], index: 2, kind: output, shape index: {}]  }
   0x1   :  { %8 = vsyncpa [#allocation5], 0  ;;  %s397_s9 = smov [#allocation2]   ;;  %s349_s13 = scalar_lea.hbm %s486_s0, 256 }
   0x2   :  { %s14_s10 = sshll.u32 %s397_s9, 4  ;;  %p350_p0 = scmp.ne.s32.totalorder %s486_s0, %s349_s13  ;;  %s15_s10 = int_to_ptr.vmem [resolvable:$true] %s14_s10 }
   0x3   :  { %p353_p1 = scmp.lt.u32.totalorder %s349_s13, %s486_s0 }
   0x5   :  { %p355_p2 = pnand %p353_p1, %p350_p0 }
   0x7   :  { %358 = shalt.err (!%p355_p2)
}
   0x8   :  { %s359_s18 = scalar_lea.vmem %s15_s10, 256  ;;  %p364_p4 = scmp.lt.s32.totalorder %s15_s10, %s15_s10 }
   0x9   :  { %p360_p3 = scmp.ne.s32.totalorder %s15_s10, %s359_s18  ;;  %p365_p5 = scmp.lt.s32.totalorder %s359_s18, %s359_s18 }
   0xb   :  { %p366_p6 = por %p365_p5, %p364_p4 }
   0xd   :  { %p367_p7 = pnand %p366_p6, %p360_p3 }
   0xf   :  { %370 = shalt.err (!%p367_p7)
}
  0x10   :  { %s398_s19 = smov 128   ;;  %s399_s20 = smov 8  }
  0x11   :  { %20 = dma.hbm_to_vmem [thread:$0]  %s486_s0, 256, %s15_s10, [#allocation3], %s398_s19, %s398_s19, %s399_s20  }
  0x12   :  { %s400_s23 = smov [#allocation4]   ;;  %s371_s27 = scalar_lea.hbm %s487_s1, 2048 }
  0x13   :  { %s26_s24 = sshll.u32 %s400_s23, 4  ;;  %p372_p8 = scmp.ne.s32.totalorder %s487_s1, %s371_s27  ;;  %s27_s24 = int_to_ptr.vmem [resolvable:$true] %s26_s24 }
  0x14   :  { %p375_p9 = scmp.lt.u32.totalorder %s371_s27, %s487_s1 }
  0x16   :  { %p377_p10 = pnand %p375_p9, %p372_p8 }
  0x18   :  { %380 = shalt.err (!%p377_p10)
}
  0x19   :  { %s381_s4 = scalar_lea.vmem %s27_s24, 2048  ;;  %p386_p12 = scmp.lt.s32.totalorder %s27_s24, %s27_s24 }
  0x1a   :  { %p382_p11 = scmp.ne.s32.totalorder %s27_s24, %s381_s4  ;;  %p387_p13 = scmp.lt.s32.totalorder %s381_s4, %s381_s4 }
  0x1c   :  { %p388_p0 = por %p387_p13, %p386_p12 }
  0x1e   :  { %p389_p1 = pnand %p388_p0, %p382_p11 }
  0x20   :  { %392 = shalt.err (!%p389_p1)
}
  0x21   :  { %32 = dma.hbm_to_vmem [thread:$0]  %s487_s1, 2048, %s27_s24, [#allocation5], %s398_s19, %s398_s19, %s399_s20  }
  0x22   :  { %393 = dma.done.wait [#allocation3], 256  }
  0x23   :  { %394 = vsyncadd [#allocation3], 4294967040 }
  0x24   :  { %395 = dma.done.wait [#allocation5], 2048  }
  0x25   :  { %396 = vsyncadd [#allocation5], 4294965248  ;;  %vm57_vm0 = vcmask 261120   ;;  %v41_v1 = vld [vmem:[#allocation4] sm:$0xff]  ;;  %v42_v2 = vld [vmem:[#allocation4 + $0x8] sm:$0xff]  ;;  %v187_v27 = vlaneseq }
  0x26   :  { %vm442_vm1 = vmpackc.low %vm57_vm0, %vm57_vm0  ;;  %v43_v3 = vld [vmem:[#allocation4 + $0x10] sm:$0xff]  ;;  %v289_v4 = vpack.c.bf16 %v42_v2, %v41_v1  ;;  %v44_v5 = vld [vmem:[#allocation4 + $0x18] sm:$0xff] }
  0x27   :  { %v295_v6 = vpack.c.bf16 %v44_v5, %v43_v3  ;;  %v39_v7 = vld [vmem:[#allocation2] sm:$0xff]  ;;  %v45_v8 = vld [vmem:[#allocation4 + $0x20] sm:$0xff]  ;;  %v46_v9 = vld [vmem:[#allocation4 + $0x28] sm:$0xff]  ;;  %v188_v28 = vand.u32 127, %v187_v27 }
  0x28   :  { %291 = vmatprep.subr.msk.bf16.mxu0 %vm442_vm1, %v289_v4  ;;  %286 = vmatprep.mubr.msk.f32.mxu0 %vm57_vm0, %v39_v7  ;;  %v301_v10 = vpack.c.bf16 %v46_v9, %v45_v8  ;;  %v47_v11 = vld [vmem:[#allocation4 + $0x30] sm:$0xff]  ;;  %v48_v12 = vld [vmem:[#allocation4 + $0x38] sm:$0xff]  ;;  %v49_v14 = vld [vmem:[#allocation4 + $0x40] sm:$0xff] }
  0x29   :  { %294 = vmatpush3.bf16.xpose.msk.msra.mxu0 %vm442_vm1, %v289_v4  ;;  %v307_v13 = vpack.c.bf16 %v48_v12, %v47_v11  ;;  %v50_v15 = vld [vmem:[#allocation4 + $0x48] sm:$0xff]  ;;  %v51_v17 = vld [vmem:[#allocation4 + $0x50] sm:$0xff]  ;;  %v52_v18 = vld [vmem:[#allocation4 + $0x58] sm:$0xff]  ;;  %vm189_vm2 = vcmp.lt.s32.totalorder %v188_v28, 4 }
  0x2a   :  { %297 = vmatprep.subr.msk.bf16.mxu0 %vm442_vm1, %v295_v6  ;;  %v313_v16 = vpack.c.bf16 %v50_v15, %v49_v14  ;;  %v319_v19 = vpack.c.bf16 %v52_v18, %v51_v17  ;;  %v53_v20 = vld [vmem:[#allocation4 + $0x60] sm:$0xff]  ;;  %v54_v21 = vld [vmem:[#allocation4 + $0x68] sm:$0xff]  ;;  %v55_v23 = vld [vmem:[#allocation4 + $0x70] sm:$0xff] }
  0x2b   :  { %v325_v22 = vpack.c.bf16 %v54_v21, %v53_v20  ;;  %v56_v24 = vld [vmem:[#allocation4 + $0x78] sm:$0xff] }
  0x2c   :  { %v331_v25 = vpack.c.bf16 %v56_v24, %v55_v23  ;;  %v40_v26 = vld [vmem:[#allocation2 + $0x8] sm:$0xff] }
  0x31   :  { %300 = vmatpush3.bf16.xpose.msk.msra.mxu0 %vm442_vm1, %v295_v6 }
  0x32   :  { %303 = vmatprep.subr.msk.bf16.mxu0 %vm442_vm1, %v301_v10 }
  0x39   :  { %306 = vmatpush3.bf16.xpose.msk.msra.mxu0 %vm442_vm1, %v301_v10 }
  0x3a   :  { %309 = vmatprep.subr.msk.bf16.mxu0 %vm442_vm1, %v307_v13 }
  0x41   :  { %312 = vmatpush3.bf16.xpose.msk.msra.mxu0 %vm442_vm1, %v307_v13 }
  0x42   :  { %315 = vmatprep.subr.msk.bf16.mxu0 %vm442_vm1, %v313_v16 }
  0x49   :  { %318 = vmatpush3.bf16.xpose.msk.msra.mxu0 %vm442_vm1, %v313_v16 }
  0x4a   :  { %321 = vmatprep.subr.msk.bf16.mxu0 %vm442_vm1, %v319_v19 }
  0x51   :  { %324 = vmatpush3.bf16.xpose.msk.msra.mxu0 %vm442_vm1, %v319_v19 }
  0x52   :  { %327 = vmatprep.subr.msk.bf16.mxu0 %vm442_vm1, %v325_v22 }
  0x59   :  { %330 = vmatpush3.bf16.xpose.msk.msra.mxu0 %vm442_vm1, %v325_v22 }
  0x5a   :  { %333 = vmatprep.subr.msk.bf16.mxu0 %vm442_vm1, %v331_v25 }
  0x61   :  { %336 = vmatpush3.bf16.xpose.msk.msra.mxu0 %vm442_vm1, %v331_v25 }
  0x68   :  { %287 = vmatmul.mubr.msk.f32.vlgmr.msra.gmra.mrb[0].mxu0 %vm57_vm0, %v40_v26 }
 0x13b   :  { %v288_v29 = vpop.f32.mrb[0].mxu0 }
 0x13c   :  { %v178_v30 = vpop.f32.mrb[1].mxu0  ;;  %v191_v32 = vsel %vm189_vm2, %v288_v29, -1e+30 }
 0x13d   :  { %v190_v31 = vsel %vm189_vm2, %v178_v30, -1e+30 }
 0x13e   :  { %192 = vmax.xlane.f32.xlu0 %v190_v31 }
 0x142   :  { %194 = vmax.xlane.f32.xlu0 %v191_v32 }
 0x1cb   :  { %v193_v33 = vpop.xlane.xlu0 %192 }
 0x1cc   :  { %v196_v34 = vsub.f32 %v190_v31, %v193_v33 }
 0x1ce   :  { %v198_v35 = vmul.f32 1.442695, %v196_v34 }
 0x1cf   :  { %v195_v36 = vpop.xlane.xlu0 %194 }
 0x1d0   :  { %341 = vpow2.f32 %v198_v35  ;;  %v197_v37 = vsub.f32 %v191_v32, %v195_v36 }
 0x1d2   :  { %v200_v38 = vmul.f32 1.442695, %v197_v37 }
 0x1d4   :  { %343 = vpow2.f32 %v200_v38 }
 0x1da   :  { %v342_v39 = vpop.eup %341 }
 0x1db   :  { %202 = vadd.xlane.f32.xlu1 %v342_v39 }
 0x1de   :  { %v344_v40 = vpop.eup %343 }
 0x1df   :  { %204 = vadd.xlane.f32.xlu1 %v344_v40 }
 0x268   :  { %v203_v41 = vpop.xlane.xlu1 %202 }
 0x269   :  { %345 = vrcp.f32 %v203_v41 }
 0x26c   :  { %v205_v42 = vpop.xlane.xlu1 %204 }
 0x26d   :  { %347 = vrcp.f32 %v205_v42 }
 0x273   :  { %v346_v43 = vpop.eup %345 }
 0x274   :  { %v207_v44 = vmul.f32 %v346_v43, %v342_v39 }
 0x276   :  { %210 = vst [vmem:[%s488_s2] sm:$0xff] %v207_v44 }
 0x277   :  { %v348_v45 = vpop.eup %347 }
 0x278   :  { %v209_v46 = vmul.f32 %v348_v45, %v344_v40 }
 0x27a   :  { %211 = vst [vmem:[%s488_s2 + $0x8] sm:$0xff] %v209_v46 }
 0x27b   :  { %216 = vsyncpa [#allocation3], 1 }
 0x27c   :  { %217 = vsyncpa [#allocation5], 1 }

// kernel: _lambda_.3
= control target key start
LH: loop header
LB: loop body
LE: loop exit
PB: predicated region body
PF: predicated region fallthrough
CT: control target
= control target key end

     0   :  { %s1339_s0 = inlined_call_operand.vmem [shape: s32[5], index: 0, kind: input, shape index: {}]   ;;  %s1340_s2 = inlined_call_operand.vmem [shape: f32[16,32], index: 2, kind: input, shape index: {}]   ;;  %s1341_s3 = inlined_call_operand.vmem [shape: f32[5,1,192,32], index: 3, kind: input, shape index: {}]   ;;  %s1342_s4 = inlined_call_operand.vmem [shape: f32[5,32,96], index: 4, kind: input, shape index: {}]   ;;  %s1343_s5 = inlined_call_operand.vmem [shape: f32[5,16,1], index: 5, kind: input, shape index: {}]   ;;  %s1344_s6 = inlined_call_operand.hbm [shape: f32[16,32], index: 6, kind: output, shape index: {}]   ;;  %s1345_s1 = inlined_call_operand.vmem [shape: s32[5], index: 1, kind: input, shape index: {}]  }
   0x1   :  { %s11_s23 = sshll.u32 %s1339_s0, 4  ;;  %s15_s26 = sshll.u32 %s1345_s1, 4  ;;  %s12_s23 = int_to_ptr.vmem [resolvable:$true] %s11_s23  ;;  %s16_s26 = int_to_ptr.vmem [resolvable:$true] %s15_s26 }
   0x2   :  { %s1053_s27 = scalar_lea.vmem %s12_s23, 16  ;;  %p1058_p1 = scmp.lt.s32.totalorder %s12_s23, %s12_s23 }
   0x3   :  { %p1054_p0 = scmp.ne.s32.totalorder %s12_s23, %s1053_s27  ;;  %p1059_p2 = scmp.lt.s32.totalorder %s1053_s27, %s1053_s27 }
   0x5   :  { %p1060_p3 = por %p1059_p2, %p1058_p1 }
   0x7   :  { %p1061_p4 = pnand %p1060_p3, %p1054_p0 }
   0x9   :  { %1064 = shalt.err (!%p1061_p4)  }
   0xa   :  { %s1133_s28 = smov [#allocation4]   ;;  %s1065_s29 = scalar_lea.vmem %s16_s26, 16 }
   0xb   :  { %14 = dma.vmem_to_smem %s12_s23, 16, %s1133_s28, [#allocation3] }
   0xc   :  { %p1066_p5 = scmp.ne.s32.totalorder %s16_s26, %s1065_s29  ;;  %p1070_p6 = scmp.lt.s32.totalorder %s16_s26, %s16_s26 }
   0xd   :  { %p1071_p7 = scmp.lt.s32.totalorder %s1065_s29, %s1065_s29 }
   0xf   :  { %p1072_p8 = por %p1071_p7, %p1070_p6 }
  0x11   :  { %p1073_p9 = pnand %p1072_p8, %p1066_p5 }
  0x13   :  { %1076 = shalt.err (!%p1073_p9)  }
  0x14   :  { %s1134_s0 = smov [#allocation5]  }
  0x15   :  { %18 = dma.vmem_to_smem %s16_s26, 16, %s1134_s0, [#allocation3] }
  0x16   :  { %1115 = dma.done.wait [#allocation3], 32 }
  0x17   :  { %1116 = vsyncadd [#allocation3], 4294967264 }
  0x18   :  { %20 = sfence }
  0x19   :  { %21 = vsyncpa [#allocation7], 0  ;;  %s1184_s1 = smov 0   ;;  %s1186_s30 = smov 0  }
  0x1a   :  { %s1188_s7 = smov 0  }
  0x1b LB: > { %s870_s8 = sadd.s32 4294967295, %s1131_s7   ;;  %s39_s9 = sadd.s32 1, %s1127_s30  ;;  %s1131_s7 = sphi %s1188_s7, %s27_s7   ;;  %s1127_s30 = sphi %s1186_s30, %s1350_s30   ;;  %s1123_s1 = sphi %s1184_s1, %s1349_s1  }
  0x1c   : > { %p40_p10 = scmp.ge.s32.totalorder %s39_s9, 5  ;;  %p874_p11 = scmp.ge.s32.totalorder %s1131_s7, 1 }
  0x1d   : > { %p279_p12 = scmp.lt.s32.totalorder %s1131_s7, 6 }
  0x1e   : > { %s1352_s9 = smov (%p40_p10, %s39_s9), 0 }
  0x1f   : > { %p280_p13 = pnand %p874_p11, %p279_p12 }
  0x20   : > { %s343_s10 = sld [smem:[#allocation4 + %s1123_s1]] (!%p280_p13)  ;;  %p388_p0 = scmp.eq.s32.totalorder (!%p280_p13), %s1123_s1, 0 }
  0x21   : > { %283 = sbr.rel (%p280_p13) target bundleno = 747 (0x2eb), region = 36  ;;  %s358_s11 = sld [smem:[#allocation4 + %s1123_s1]] (!%p280_p13) }
  0x22   : > { %s372_s12 = sld [smem:[#allocation4 + %s1123_s1]] (!%p280_p13) }
  0x26   : > { %p344_p1 = scmp.lt.s32.totalorder (!%p280_p13), %s343_s10, 4 }
  0x27   : > { %p359_p2 = scmp.lt.s32.totalorder (!%p280_p13), %s358_s11, 4 }
  0x28   : > { %p374_p3 = scmp.lt.s32.totalorder %s372_s12, 4  ;;  %s1354_s10 = smov (!%p344_p1, %s343_s10), 4  ;;  %vm393_vm0 = vcmask (%p388_p0), 261120   ;;  %v1135_v0 = vmov (%p388_p0), 0.0  }
  0x29   : > { %s1356_s11 = smov (!%p359_p2, %s358_s11), 4  ;;  %s1002_s13 = smul.u32 192, %s1354_s10  ;;  %394 = vst.msk [vmem:[#allocation2] sm:$0xff] (%p388_p0), %vm393_vm0, %v1135_v0  ;;  %395 = vst.msk [vmem:[#allocation2 + $0x8] sm:$0xff] (%p388_p0), %vm393_vm0, %v1135_v0 }
  0x2a   : > { %s921_s14 = sshll.u32 %s1356_s11, 5  ;;  %s1358_s12 = smov (!%p374_p3, %s372_s12), 4 }
  0x2b   : > { %s1212_s17 = scalar_lea.vmem %s1341_s3, %s1002_s13  ;;  %s1217_s20 = scalar_lea.vmem %s1342_s4, %s921_s14 }
  0x2c   : > { %s922_s21 = sshll.u32 %s1358_s12, 4  ;;  %392 = sbr.rel (!%p388_p0) target bundleno = 51 (0x33), region = 40 }
  0x2d   : > { %s1222_s24 = scalar_lea.vmem %s1343_s5, %s922_s21 }
  0x33 PF: > { %s398_s25 = sld [smem:[#allocation5 + %s1123_s1]] }
  0x39   : > { %p881_p4 = scmp.le.s32.totalorder %s398_s25, 0 }
  0x3a   : > { %v405_v1 = vld [vmem:[%s1212_s17] sm:$0xff] (!%p881_p4)  ;;  %v406_v2 = vld [vmem:[%s1212_s17 + $0x8] sm:$0xff] (!%p881_p4)  ;;  %vm429_vm1 = vcmask (!%p881_p4), 261120   ;;  %v1136_v3 = vmov (!%p881_p4), 0.0|0.0   ;;  %v1137_v6 = vmov (!%p881_p4), 0.0   ;;  %v407_v7 = vld [vmem:[%s1212_s17 + $0x10] sm:$0xff] (!%p881_p4) }
  0x3b   : > { %402 = sbr.rel (%p881_p4) target bundleno = 712 (0x2c8), region = 44  ;;  %942 = vmatprep.subr.bf16.mxu0 (!%p881_p4), %v1136_v3  ;;  %v943_v4 = vpack.c.bf16 (!%p881_p4), %v406_v2, %v405_v1  ;;  %vm1229_vm2 = vmpackc.low (!%p881_p4), %vm429_vm1, %vm429_vm1  ;;  %572 = vmatprep.mubr.f32.mxu0 (!%p881_p4), %v1137_v6  ;;  %v408_v8 = vld [vmem:[%s1212_s17 + $0x18] sm:$0xff] (!%p881_p4)  ;;  %v409_v10 = vld [vmem:[%s1212_s17 + $0x20] sm:$0xff] (!%p881_p4)  ;;  %vm621_vm3 = vcmask (!%p881_p4), 785408   ;;  %v1138_v49 = vmov (!%p881_p4), 0   ;;  %s1139_s0 = smov (!%p881_p4), 32  }
  0x3c   : > { %v947_v9 = vpack.c.bf16 (!%p881_p4), %v408_v8, %v407_v7  ;;  %v410_v11 = vld [vmem:[%s1212_s17 + $0x28] sm:$0xff] (!%p881_p4)  ;;  %v411_v13 = vld [vmem:[%s1212_s17 + $0x30] sm:$0xff] (!%p881_p4)  ;;  %v412_v14 = vld [vmem:[%s1212_s17 + $0x38] sm:$0xff] (!%p881_p4)  ;;  %1044 = vset.pattern.permute.xlu1 (!%p881_p4), %v1138_v49  ;;  %1043 = vset.pattern.permute.xlu0 (!%p881_p4), %v1138_v49 }
  0x3d   : > { %945 = vmatpush1.bf16.xpose.msk.msra.mxu0 (!%p881_p4), %vm1229_vm2, %v943_v4  ;;  %v951_v12 = vpack.c.bf16 (!%p881_p4), %v410_v11, %v409_v10  ;;  %v955_v15 = vpack.c.bf16 (!%p881_p4), %v412_v14, %v411_v13  ;;  %v413_v16 = vld [vmem:[%s1212_s17 + $0x40] sm:$0xff] (!%p881_p4)  ;;  %v414_v17 = vld [vmem:[%s1212_s17 + $0x48] sm:$0xff] (!%p881_p4)  ;;  %v415_v19 = vld [vmem:[%s1212_s17 + $0x50] sm:$0xff] (!%p881_p4) }
  0x3e   : > { %946 = vmatprep.subr.bf16.mxu0 (!%p881_p4), %v1136_v3  ;;  %v959_v18 = vpack.c.bf16 (!%p881_p4), %v414_v17, %v413_v16  ;;  %v416_v20 = vld [vmem:[%s1212_s17 + $0x58] sm:$0xff] (!%p881_p4)  ;;  %v417_v22 = vld [vmem:[%s1212_s17 + $0x60] sm:$0xff] (!%p881_p4)  ;;  %v418_v23 = vld [vmem:[%s1212_s17 + $0x68] sm:$0xff] (!%p881_p4) }
  0x3f   : > { %v963_v21 = vpack.c.bf16 (!%p881_p4), %v416_v20, %v415_v19  ;;  %v967_v24 = vpack.c.bf16 (!%p881_p4), %v418_v23, %v417_v22  ;;  %v419_v25 = vld [vmem:[%s1212_s17 + $0x70] sm:$0xff] (!%p881_p4)  ;;  %v420_v26 = vld [vmem:[%s1212_s17 + $0x78] sm:$0xff] (!%p881_p4)  ;;  %v421_v28 = vld [vmem:[%s1212_s17 + $0x80] sm:$0xff] (!%p881_p4) }
  0x40   : > { %v971_v27 = vpack.c.bf16 (!%p881_p4), %v420_v26, %v419_v25  ;;  %v422_v29 = vld [vmem:[%s1212_s17 + $0x88] sm:$0xff] (!%p881_p4)  ;;  %v423_v31 = vld [vmem:[%s1212_s17 + $0x90] sm:$0xff] (!%p881_p4)  ;;  %v424_v32 = vld [vmem:[%s1212_s17 + $0x98] sm:$0xff] (!%p881_p4) }
  0x41   : > { %v975_v30 = vpack.c.bf16 (!%p881_p4), %v422_v29, %v421_v28  ;;  %v979_v33 = vpack.c.bf16 (!%p881_p4), %v424_v32, %v423_v31  ;;  %v425_v34 = vld [vmem:[%s1212_s17 + $0xa0] sm:$0xff] (!%p881_p4)  ;;  %v426_v35 = vld [vmem:[%s1212_s17 + $0xa8] sm:$0xff] (!%p881_p4)  ;;  %v427_v37 = vld [vmem:[%s1212_s17 + $0xb0] sm:$0xff] (!%p881_p4) }
  0x42   : > { %v983_v36 = vpack.c.bf16 %v426_v35, %v425_v34  ;;  %v428_v38 = vld [vmem:[%s1212_s17 + $0xb8] sm:$0xff]  ;;  %v403_v40 = vld [vmem:[%s1340_s2] sm:$0xff]  ;;  %v404_v41 = vld [vmem:[%s1340_s2 + $0x8] sm:$0xff] }
  0x43   : > { %v987_v39 = vpack.c.bf16 %v428_v38, %v427_v37  ;;  %v617_v42 = vld [vmem:[%s1217_s20] sm:$0xff]  ;;  %v618_v43 = vld [vmem:[%s1217_s20 + $0x8] sm:$0xff]  ;;  %vm991_vm4 = vmpackc.low %vm621_vm3, %vm621_vm3 }
  0x44   : > { %v990_v44 = vpack.c.bf16 %v618_v43, %v617_v42  ;;  %v619_v45 = vld [vmem:[%s1217_s20 + $0x10] sm:$0xff]  ;;  %v620_v46 = vld [vmem:[%s1217_s20 + $0x18] sm:$0xff]  ;;  %v717_v53 = vld [vmem:[%s1222_s24] sm:$0xff] }
  0x45   : > { %949 = vmatpush1.bf16.xpose.msk.msra.mxu0 %vm1229_vm2, %v947_v9  ;;  %v996_v47 = vpack.c.bf16 %v620_v46, %v619_v45  ;;  %v718_v54 = vld [vmem:[%s1222_s24 + $0x8] sm:$0xff] }
  0x46   : > { %950 = vmatprep.subr.bf16.mxu0 %v1136_v3  ;;  %992 = vmatprep.subr.msk.bf16.mxu1 %vm991_vm4, %v990_v44 }
  0x47   : > { %995 = vmatpush3.bf16.xpose.msk.msra.mxu1 %vm991_vm4, %v990_v44 }
  0x48   : > { %998 = vmatprep.subr.msk.bf16.mxu1 %vm991_vm4, %v996_v47 }
  0x4d   : > { %953 = vmatpush1.bf16.xpose.msk.msra.mxu0 %vm1229_vm2, %v951_v12  ;;  %v716_v12 = vld [vmem:[#allocation2 + $0x8] sm:$0xff] }
  0x4e   : > { %954 = vmatprep.subr.bf16.mxu0 %v1136_v3 }
  0x4f   : > { %1001 = vmatpush3.bf16.xpose.msk.msra.mxu1 %vm991_vm4, %v996_v47 }
  0x55   : > { %957 = vmatpush1.bf16.xpose.msk.msra.mxu0 %vm1229_vm2, %v955_v15  ;;  %v715_v15 = vld [vmem:[#allocation2] sm:$0xff] }
  0x56   : > { %958 = vmatprep.subr.bf16.mxu0 %v1136_v3 }
  0x5d   : > { %961 = vmatpush1.bf16.xpose.msk.msra.mxu0 %vm1229_vm2, %v959_v18 }
  0x5e   : > { %962 = vmatprep.subr.bf16.mxu0 %v1136_v3 }
  0x65   : > { %965 = vmatpush1.bf16.xpose.msk.msra.mxu0 %vm1229_vm2, %v963_v21 }
  0x66   : > { %966 = vmatprep.subr.bf16.mxu0 %v1136_v3 }
  0x6d   : > { %969 = vmatpush1.bf16.xpose.msk.msra.mxu0 %vm1229_vm2, %v967_v24 }
  0x6e   : > { %970 = vmatprep.subr.bf16.mxu0 %v1136_v3 }
  0x75   : > { %973 = vmatpush1.bf16.xpose.msk.msra.mxu0 %vm1229_vm2, %v971_v27 }
  0x76   : > { %974 = vmatprep.subr.bf16.mxu0 %v1136_v3 }
  0x7d   : > { %977 = vmatpush1.bf16.xpose.msk.msra.mxu0 %vm1229_vm2, %v975_v30 }
  0x7e   : > { %978 = vmatprep.subr.bf16.mxu0 %v1136_v3 }
  0x85   : > { %981 = vmatpush1.bf16.xpose.msk.msra.mxu0 %vm1229_vm2, %v979_v33 }
  0x86   : > { %982 = vmatprep.subr.bf16.mxu0 %v1136_v3 }
  0x8d   : > { %985 = vmatpush1.bf16.xpose.msk.msra.mxu0 %vm1229_vm2, %v983_v36 }
  0x8e   : > { %986 = vmatprep.subr.bf16.mxu0 %v1136_v3 }
  0x95   : > { %989 = vmatpush1.bf16.xpose.msk.msra.mxu0 %vm1229_vm2, %v987_v39 }
  0x9c   : > { %906 = vmatmul.mubr.msk.f32.vlgmr.msra.gmra.mrb[0].mxu0 %vm429_vm1, %v403_v40 }
  0x9d   : > { %578 = vmatprep.mubr.f32.mxu0 %v1137_v6 }
  0xa0   : > { %907 = vmatmul.mubr.msk.f32.gmra.mrb[2].mxu0 %vm429_vm1, %v404_v41 }
 0x16f   : > { %v574_v48 = vpop.f32.mrb[0].mxu0 }
 0x170   : > { %603 = vrot.lane.b32.xlu0 %v574_v48, %s1139_s0  ;;  %v576_v50 = vpop.f32.mrb[1].mxu0  ;;  %v908_v55 = vmul.f32 -1.442695, %v574_v48 }
 0x172   : > { %1045 = vpow2.f32 %v908_v55 }
 0x173   : > { %v580_v51 = vpop.f32.mrb[2].mxu0 }
 0x174   : > { %605 = vrot.lane.b32.xlu0 %v576_v50, %s1139_s0  ;;  %607 = vrot.lane.b32.xlu1 %v580_v51, %s1139_s0  ;;  %v582_v52 = vpop.f32.mrb[3].mxu0  ;;  %v909_v56 = vmul.f32 -1.442695, %v580_v51 }
 0x176   : > { %1047 = vpow2.f32 %v909_v56 }
 0x178   : > { %609 = vrot.lane.b32.xlu1 %v582_v52, %s1139_s0  ;;  %721 = vperm.xlu0 %1043, %v717_v53  }
 0x17c   : > { %726 = vperm.xlu1 %1044, %v718_v54   ;;  %v1046_v57 = vpop.eup %1045 }
 0x17d   : > { %v591_v58 = vadd.f32 1.0, %v1046_v57 }
 0x17f   : > { %1049 = vrcp.f32 %v591_v58 }
 0x180   : > { %v1048_v59 = vpop.eup %1047 }
 0x181   : > { %v592_v60 = vadd.f32 1.0, %v1048_v59 }
 0x183   : > { %1051 = vrcp.f32 %v592_v60 }
 0x189   : > { %v1050_v62 = vpop.eup %1049 }
 0x18a   : > { %v597_v1 = vmul.f32 %v1050_v62, %v574_v48 }
 0x18d   : > { %v1052_v2 = vpop.eup %1051 }
 0x18e   : > { %v598_v5 = vmul.f32 %v1052_v2, %v580_v51 }
 0x1e2   : > { %v604_v61 = vpop.permute.xlu0 %603 }
 0x1e6   : > { %v606_v63 = vpop.permute.xlu0 %605  ;;  %v608_v0 = vpop.permute.xlu1 %607 }
 0x1e7   : > { %v611_v3 = vsel %vm429_vm1, %v604_v61, %v606_v63 }
 0x1e8   : > { %v615_v4 = vmul.f32 %v611_v3, %v597_v1 }
 0x1ea   : > { %939 = vmatprep.mubr.msk.f32.mxu1 %vm621_vm3, %v615_v4  ;;  %v610_v6 = vpop.permute.xlu1 %609 }
 0x1eb   : > { %v612_v7 = vsel %vm429_vm1, %v608_v0, %v610_v6 }
 0x1ec   : > { %v616_v8 = vmul.f32 %v612_v7, %v598_v5 }
 0x1ee   : > { %940 = vmatmul.mubr.msk.f32.vlgmr.msra.gmra.mrb[0].mxu1 %vm621_vm3, %v616_v8 }
 0x1f7   : > { %v722_v10 = vpop.permute.xlu0 %721 }
 0x1fb   : > { %v727_v9 = vpop.permute.xlu1 %726 }
 0x2c1   : > { %v941_v11 = vpop.f32.mrb[0].mxu1 }
 0x2c2   : > { %v730_v13 = vmul.f32 %v941_v11, %v727_v9  ;;  %v706_v14 = vpop.f32.mrb[1].mxu1 }
 0x2c3   : > { %v729_v16 = vmul.f32 %v722_v10, %v706_v14 }
 0x2c4   : > { %v732_v17 = vadd.f32 %v730_v13, %v716_v12 }
 0x2c5   : > { %v731_v18 = vadd.f32 %v729_v16, %v715_v15 }
 0x2c6   : > { %734 = vst.msk [vmem:[#allocation2 + $0x8] sm:$0xff] %vm429_vm1, %v732_v17 }
 0x2c7   : > { %733 = vst.msk [vmem:[#allocation2] sm:$0xff] %vm429_vm1, %v731_v18 }
 0x2c8 PF: > { %p735_p5 = scmp.eq.s32.totalorder %s1123_s1, 4 }
 0x2c9   : > { %vm742_vm5 = vcmask (%p735_p5), 261120  }
 0x2ca   : > { %739 = sbr.rel (!%p735_p5) target bundleno = 721 (0x2d1), region = 48 }
 0x2cd   : > { %v741_v20 = vld [vmem:[#allocation2 + $0x8] sm:$0xff] (%p735_p5) }
 0x2ce   : > { %v740_v19 = vld [vmem:[#allocation2] sm:$0xff] (%p735_p5)  ;;  %744 = vst.msk [vmem:[#allocation6 + $0x8] sm:$0xff] (%p735_p5), %vm742_vm5, %v741_v20 }
 0x2cf   : > { %743 = vst.msk [vmem:[#allocation6] sm:$0xff] (%p735_p5), %vm742_vm5, %v740_v19 }
 0x2d1 PF: > { %p1304_p6 = scmp.eq.s32.totalorder %s870_s8, 4  ;;  %s1140_s11 = smov [#allocation6]  }
 0x2d2   : > { %s754_s12 = sshll.u32 %s1140_s11, 4  ;;  %s755_s12 = int_to_ptr.vmem [resolvable:$true] %s754_s12 }
 0x2d3   : > { %s1077_s13 = scalar_lea.vmem %s755_s12, 256  ;;  %p1084_p10 = scmp.lt.s32.totalorder %s755_s12, %s755_s12 }
 0x2d4   : > { %p1078_p7 = scmp.ne.s32.totalorder %s755_s12, %s1077_s13  ;;  %p1085_p11 = scmp.lt.s32.totalorder %s1077_s13, %s1077_s13 }
 0x2d6   : > { %p1079_p8 = pnand %p1078_p7, %p1304_p6  ;;  %p1086_p12 = por %p1085_p11, %p1084_p10 }
 0x2d8   : > { %p1080_p9 = pneg %p1079_p8 }
 0x2da   : > { %p1087_p13 = pnand %p1086_p12, %p1080_p9 }
 0x2dc   : > { %1090 = shalt.err (!%p1087_p13)
}
 0x2dd   : > { %s1091_s8 = scalar_lea.hbm %s1344_s6, 256 }
 0x2de   : > { %p1092_p0 = scmp.ne.s32.totalorder %s1344_s6, %s1091_s8  ;;  %p1097_p3 = scmp.lt.u32.totalorder %s1091_s8, %s1344_s6 }
 0x2e0   : > { %p1093_p1 = pnand %p1092_p0, %p1304_p6 }
 0x2e2   : > { %p1094_p2 = pneg %p1093_p1 }
 0x2e4   : > { %p1099_p4 = pnand %p1097_p3, %p1094_p2 }
 0x2e6   : > { %1102 = shalt.err (!%p1099_p4)
}
 0x2e7   : > { %s1141_s19 = smov 128   ;;  %s1142_s20 = smov 8  }
 0x2e8   : > { %1004 = dma.vmem_to_hbm [thread:$0]  (%p1304_p6), %s755_s12, 256, %s1344_s6, [#allocation7], %s1141_s19, %s1141_s19, %s1142_s20  }
 0x2e9   : > { %1118 = dma.done.wait (%p1304_p6), [#allocation7], 256  }
 0x2ea   : > { %1120 = vsyncadd (%p1304_p6), [#allocation7], 4294967040 }
 0x2eb PF: > { %s27_s7 = sadd.s32 1, %s1131_s7   ;;  %s1349_s1 = smov %s1127_s30 }
 0x2ec   : > { %p24_p5 = scmp.ge.s32.totalorder %s27_s7, 7   ;;  %s1350_s30 = smov %s1352_s9 }
 0x2ee   :  { %26 = sbr.rel (!%p24_p5) target bundleno = 27 (0x1b), region = 85 }
 0x2f5   :  { %770 = vsyncpa [#allocation7], 1 }
 0x2f6   :  { %772 = vsyncpa [#allocation7 + $0x1], 1 }

</bundles_post_ra>
